<compile_context>
chip_gen: v6e
topology: v6e:2x2x1
jax: 0.10.0
libtpu: 0.0.40
codegen_flags: <defaults>
</compile_context>

<pallas_src>
import functools

import numpy as np
import jax
import jax.numpy as jnp
from jax.experimental import pallas as pl
from jax.experimental.pallas import tpu as pltpu

LANES = 128
MAX_TILE_ROWS = 2048     # 2048 x 128 f32 = 1 MiB per input block


def _cdiv(a, b):
    return -(-a // b)


def _round_up(a, m):
    return _cdiv(a, m) * m


def _num_tensorcores() -> int:
    """v7x has 2 TensorCores per chip; v5e/v6e have 1."""
    try:
        kind = jax.devices()[0].device_kind.lower()
    except Exception:
        return 1
    return 2 if "v7" in kind else 1


# ----------------------------------------------------------------------------
# Host-side w_star construction (verbatim port of the PyTorch/numpy logic).
# This is __init__-time work, not a device hot path.
# ----------------------------------------------------------------------------
def _optimal_d(s: np.ndarray) -> int:
    variance = np.std(s)
    mean = np.average(s)
    for i in range(s.shape[0] - 1):
        if s[i] < mean + variance:
            return i
    return s.shape[0] - 1


def _approximate_svd_tensor(w: np.ndarray) -> np.ndarray:
    w_shape = w.shape
    n1, n2 = w_shape[0], w_shape[1]
    if w_shape[2] == 1 or w_shape[3] == 1:
        return w
    u, s, v = np.linalg.svd(w)
    ds = []
    for i in range(n1):
        for j in range(n2):
            ds.append(_optimal_d(s[i, j]))
    d = int(np.mean(ds))
    w = np.matmul(u[..., 0:d], s[..., 0:d, None] * v[..., 0:d, :])
    return w


def get_w_star(params_np):
    vec_list = []
    for w in params_np:
        if len(w.shape) == 4:
            w = _approximate_svd_tensor(w)
        vec_list.append(np.reshape(w, -1))
    return np.concatenate(vec_list, axis=0).astype(np.float32)


# ----------------------------------------------------------------------------
# Slab packing helpers (run ONCE per parameter set, outside the per-step path).
# ----------------------------------------------------------------------------
def w_slab_geometry(n_elems: int, ncores: int):
    """Rows / tile size / tiles-per-core for the parameter-norm stream."""
    rows_needed = max(1, _cdiv(n_elems, LANES))
    # multiple of 16 rows keeps the block legal for f32 and (optional) bf16 slabs
    tile_rows = min(MAX_TILE_ROWS, _round_up(_cdiv(rows_needed, ncores), 16))
    rows = _round_up(rows_needed, ncores * tile_rows)
    n_tiles = rows // (ncores * tile_rows)
    return rows, tile_rows, n_tiles


def pack_to_slab(arrays, rows, dtype=jnp.float32):
    """Flatten + concat `arrays` and zero-pad into a lane-dense (rows, 128) slab.

    Pad is appended inside the single concatenate, so the packed vector is
    materialized exactly once.  Padded entries are zero in BOTH w and w_star
    slabs, so they contribute nothing to the norm.
    (Optional further win: store slabs as bf16 — kernel already upcasts — but
    that changes numerics slightly, so we keep f32 here.)
    """
    flats = [jnp.ravel(a).astype(dtype) for a in arrays]
    n = sum(int(f.shape[0]) for f in flats)
    pad = rows * LANES - n
    if pad:
        flats.append(jnp.zeros((pad,), dtype))
    return jnp.concatenate(flats).reshape(rows, LANES)


# ----------------------------------------------------------------------------
# Kernel: streaming sum-of-squares of (w - w_star), per-core (8,128) partials.
# The output block is the resident accumulator (init at i==0, += per tile).
# ----------------------------------------------------------------------------
def _wnorm_partial_kernel(w_ref, ws_ref, part_ref, *, reduce_axis):
    i = pl.program_id(reduce_axis)

    @pl.when(i == 0)
    def _init():
        part_ref[...] = jnp.zeros_like(part_ref)

    d = w_ref[...].astype(jnp.float32) - ws_ref[...].astype(jnp.float32)
    sq = d * d                                     # pure VPU
    g = sq.shape[0] // 8
    # Tile-preserving (rows,128) -> (g,8,128) regroup; sublane-group sum folds
    # each input block straight into the resident (8,128) output accumulator.
    part_ref[...] += sq.reshape(g, 8, LANES).sum(axis=0)


def _wnorm_single_core(w_slab, ws_slab, tile_rows, n_total_tiles):
    kern = functools.partial(_wnorm_partial_kernel, reduce_axis=0)
    return pl.pallas_call(
        kern,
        out_shape=jax.ShapeDtypeStruct((8, LANES), jnp.float32),
        grid=(n_total_tiles,),
        in_specs=[
            pl.BlockSpec((tile_rows, LANES), lambda i: (i, 0)),
            pl.BlockSpec((tile_rows, LANES), lambda i: (i, 0)),
        ],
        out_specs=pl.BlockSpec((8, LANES), lambda i: (0, 0)),
        compiler_params=pltpu.CompilerParams(
            dimension_semantics=("arbitrary",)),
    )(w_slab, ws_slab)


def _wnorm_multi_core(w_slab, ws_slab, tile_rows, n_tiles, ncores):
    kern = functools.partial(_wnorm_partial_kernel, reduce_axis=1)
    return pl.pallas_call(
        kern,
        out_shape=jax.ShapeDtypeStruct((ncores * 8, LANES), jnp.float32),
        grid=(ncores, n_tiles),
        in_specs=[
            pl.BlockSpec((tile_rows, LANES), lambda c, i: (c * n_tiles + i, 0)),
            pl.BlockSpec((tile_rows, LANES), lambda c, i: (c * n_tiles + i, 0)),
        ],
        out_specs=pl.BlockSpec((8, LANES), lambda c, i: (c, 0)),
        compiler_params=pltpu.CompilerParams(
            dimension_semantics=(pltpu.CORE_PARALLEL, pltpu.ARBITRARY)),
    )(w_slab, ws_slab)


def w_norm_sq_partials(w_slab, ws_slab, tile_rows, n_tiles, ncores):
    assert w_slab.shape == ws_slab.shape
    assert w_slab.shape == (ncores * n_tiles * tile_rows, LANES)
    if ncores > 1:
        try:
            # v7x: guarantee the 2-TensorCore split of the HBM stream.
            return _wnorm_multi_core(w_slab, ws_slab, tile_rows, n_tiles, ncores)
        except Exception:
            pass  # fall back: stream the whole slab sequentially on one core
    return _wnorm_single_core(w_slab, ws_slab, tile_rows, ncores * n_tiles)


# ----------------------------------------------------------------------------
# ASRLoss forward.
# ----------------------------------------------------------------------------
def asr_loss(output, target, w_slab, ws_slab, tile_rows, n_tiles, ncores, *,
             alpha=0.05, damped=None, epoch=1):
    """MSE(output, target) + alpha * || w - w_star ||_2.

    `w_slab` is the CURRENT parameter vector already packed into the same
    lane-dense (rows, 128) slab layout as `ws_slab` (kept pre-packed in the
    train/optimizer state; no per-step concat/reshape pass here).
    """
    if damped is not None:
        alpha = alpha / (damped(epoch) + 1.0)     # host-side scalar glue

    partials = w_norm_sq_partials(w_slab, ws_slab, tile_rows, n_tiles, ncores)
    norm = jnp.sqrt(jnp.sum(partials))            # tiny partials -> scalar

    # output/target are 2x16 elements; a dedicated Pallas launch would be pure
    # overhead, so the injected MSE loss_function is plain jnp wrapper glue.
    diff = output.astype(jnp.float32) - target.astype(jnp.float32)
    mse = jnp.mean(diff * diff)
    return mse + jnp.float32(alpha) * norm


# ----------------------------------------------------------------------------
# Demo: deterministic synthetic "net" parameters + inputs.
# ----------------------------------------------------------------------------
if __name__ == "__main__":
    key = jax.random.PRNGKey(0)
    keys = jax.random.split(key, 8)

    # Synthetic net parameters (4-D conv weights exercise the SVD path;
    # the 1x1 conv exercises the early-return branch).
    params = [
        jax.random.normal(keys[0], (4, 3, 3, 3), jnp.float32),   # conv1 weight
        jax.random.normal(keys[1], (4,), jnp.float32),           # conv1 bias
        jax.random.normal(keys[2], (8, 4, 1, 1), jnp.float32),   # 1x1 conv weight
        jax.random.normal(keys[3], (8,), jnp.float32),           # 1x1 conv bias
        jax.random.normal(keys[4], (16, 8), jnp.float32),        # fc weight
        jax.random.normal(keys[5], (16,), jnp.float32),          # fc bias
    ]

    ncores = _num_tensorcores()
    n_w = int(sum(int(np.prod(p.shape)) for p in params))
    rows, tile_rows, n_tiles = w_slab_geometry(n_w, ncores)

    # w_star built exactly as in the PyTorch module __init__ (numpy SVD),
    # packed into its lane-dense slab ONCE and reused every forward.
    w_star_np = get_w_star([np.asarray(p) for p in params])
    assert int(w_star_np.size) == n_w
    ws_slab = pack_to_slab([jnp.asarray(w_star_np)], rows)

    # Current parameters packed ONCE up front (no per-step re-packing).
    # TODO(synk): in a real training loop keep the parameter vector stored in
    # this (rows, 128) slab layout inside the optimizer/train state (donated /
    # aliased), so this packing never appears on the per-step path.
    w_slab = pack_to_slab(params, rows)

    # Example forward inputs (output/target for the MSE loss_function).
    output = jax.random.normal(keys[6], (2, 16), jnp.float32)
    target = jax.random.normal(keys[7], (2, 16), jnp.float32)

    alpha = 0.05
    loss = asr_loss(output, target, w_slab, ws_slab, tile_rows, n_tiles,
                    ncores, alpha=alpha, damped=None, epoch=1)
    loss = jax.block_until_ready(loss)

    # Pure-JAX reference check.
    w_vec_ref = jnp.concatenate([jnp.ravel(p) for p in params])
    ref = (jnp.mean((output - target) ** 2)
           + alpha * jnp.linalg.norm(w_vec_ref - jnp.asarray(w_star_np)))
    np.testing.assert_allclose(np.asarray(loss), np.asarray(ref),
                               rtol=1e-4, atol=1e-5)

    print("KERNEL_OK")
</pallas_src>

<mosaic_0001>
module attributes {stable_mosaic.version = 11 : i64} {
  func.func @_wnorm_partial_kernel(%arg0: i32, %arg1: memref<16x128xf32, #tpu.memory_space<vmem>>, %arg2: memref<16x128xf32, #tpu.memory_space<vmem>>, %arg3: memref<8x128xf32, #tpu.memory_space<vmem>>) attributes {dimension_semantics = [#tpu.dimension_semantics<arbitrary>], iteration_bounds = array<i64: 1>, scalar_prefetch = 0 : i64, scratch_operands = 0 : i64, tpu.core_type = #tpu.core_type<tc>, window_params = [{transform_indices = @transform_0, window_bounds = array<i64: 16, 128>}, {transform_indices = @transform_1, window_bounds = array<i64: 16, 128>}, {pipeline_mode = #tpu.pipeline_mode<synchronous>, transform_indices = @transform_2, window_bounds = array<i64: 8, 128>}]} {
    %c0_i32 = arith.constant 0 : i32
    %0 = arith.cmpi eq, %arg0, %c0_i32 : i32
    %1 = arith.extui %0 : i1 to i32
    %c0_i32_0 = arith.constant 0 : i32
    %2 = arith.cmpi ne, %1, %c0_i32_0 : i32
    scf.if %2 {
      %cst_8 = arith.constant 0.000000e+00 : f32
      %12 = vector.broadcast %cst_8 : f32 to vector<8x128xf32>
      %c0_9 = arith.constant 0 : index
      %c0_10 = arith.constant 0 : index
      %13 = vector.load %arg3[%c0_9, %c0_10] : memref<8x128xf32, #tpu.memory_space<vmem>>, vector<8x128xf32>
      tpu.vector_store %arg3[%c0_9, %c0_10], %12 {strides = array<i32>} : memref<8x128xf32, #tpu.memory_space<vmem>>, vector<8x128xf32>,
    } else {
    }
    %c0 = arith.constant 0 : index
    %c0_1 = arith.constant 0 : index
    %3 = vector.load %arg1[%c0, %c0_1] : memref<16x128xf32, #tpu.memory_space<vmem>>, vector<16x128xf32>
    %c0_2 = arith.constant 0 : index
    %c0_3 = arith.constant 0 : index
    %4 = vector.load %arg2[%c0_2, %c0_3] : memref<16x128xf32, #tpu.memory_space<vmem>>, vector<16x128xf32>
    %5 = arith.subf %3, %4 : vector<16x128xf32>
    %6 = arith.mulf %5, %5 : vector<16x128xf32>
    %c0_4 = arith.constant 0 : index
    %c0_5 = arith.constant 0 : index
    %7 = vector.load %arg3[%c0_4, %c0_5] : memref<8x128xf32, #tpu.memory_space<vmem>>, vector<8x128xf32>
    %8 = vector.shape_cast %6 : vector<16x128xf32> to vector<2x8x128xf32>
    %cst = arith.constant dense<0.000000e+00> : vector<8x128xf32>
    %9 = vector.multi_reduction <add>, %8, %cst [0] : vector<2x8x128xf32> to vector<8x128xf32>
    %10 = arith.addf %7, %9 : vector<8x128xf32>
    %c0_6 = arith.constant 0 : index
    %c0_7 = arith.constant 0 : index
    %11 = vector.load %arg3[%c0_6, %c0_7] : memref<8x128xf32, #tpu.memory_space<vmem>>, vector<8x128xf32>
    tpu.vector_store %arg3[%c0_6, %c0_7], %10 {strides = array<i32>} : memref<8x128xf32, #tpu.memory_space<vmem>>, vector<8x128xf32>,
    return
  }
  func.func @transform_0(%arg0: i32) -> (i32, i32) {
    %c0_i32 = arith.constant 0 : i32
    %c0_i32_0 = arith.constant 0 : i32
    return %arg0, %c0_i32 : i32, i32
  }
  func.func @transform_1(%arg0: i32) -> (i32, i32) {
    %c0_i32 = arith.constant 0 : i32
    %c0_i32_0 = arith.constant 0 : i32
    return %arg0, %c0_i32 : i32, i32
  }
  func.func @transform_2(%arg0: i32) -> (i32, i32) {
    %c0_i32 = arith.constant 0 : i32
    %c0_i32_0 = arith.constant 0 : i32
    %c0_i32_1 = arith.constant 0 : i32
    return %c0_i32, %c0_i32_0 : i32, i32
  }
}

</mosaic_0001>

<bundles_post_ra>
// kernel: tpu_custom_call.1
= control target key start
LH: loop header
LB: loop body
LE: loop exit
PB: predicated region body
PF: predicated region fallthrough
CT: control target
= control target key end

     0   :  { %7 = vsyncpa [#allocation3], 0  ;;  %s174_s0 = inlined_call_operand.hbm [shape: f32[16,128], index: 0, kind: input, shape index: {}]   ;;  %s175_s1 = inlined_call_operand.hbm [shape: f32[16,128], index: 1, kind: input, shape index: {}]   ;;  %s176_s2 = inlined_call_operand.hbm [shape: f32[8,128], index: 2, kind: output, shape index: {}]  }
   0x1   :  { %8 = vsyncpa [#allocation6], 0 }
   0x2   :  { %9 = vsyncpa [#allocation4], 0  ;;  %s145_s9 = smov [#allocation2]  }
   0x3   :  { %s15_s10 = sshll.u32 %s145_s9, 4  ;;  %s16_s10 = int_to_ptr.vmem [resolvable:$true] %s15_s10 }
   0x4   :  { %s87_s11 = scalar_lea.vmem %s16_s10, 256  ;;  %p92_p1 = scmp.lt.s32.totalorder %s16_s10, %s16_s10 }
   0x5   :  { %p88_p0 = scmp.ne.s32.totalorder %s16_s10, %s87_s11  ;;  %p93_p2 = scmp.lt.s32.totalorder %s87_s11, %s87_s11 }
   0x7   :  { %p94_p3 = por %p93_p2, %p92_p1 }
   0x9   :  { %p95_p4 = pnand %p94_p3, %p88_p0 }
   0xb   :  { %98 = shalt.err (!%p95_p4)
}
   0xc   :  { %s146_s12 = smov 128   ;;  %s147_s13 = smov 8  }
   0xd   :  { %21 = dma.hbm_to_vmem [thread:$0]  %s174_s0, 256, %s16_s10, [#allocation3], %s146_s12, %s146_s12, %s147_s13  }
   0xe   :  { %s148_s16 = smov [#allocation5]  }
   0xf   :  { %s27_s17 = sshll.u32 %s148_s16, 4  ;;  %s28_s17 = int_to_ptr.vmem [resolvable:$true] %s27_s17 }
  0x10   :  { %s107_s18 = scalar_lea.vmem %s28_s17, 256  ;;  %p112_p6 = scmp.lt.s32.totalorder %s28_s17, %s28_s17 }
  0x11   :  { %p108_p5 = scmp.ne.s32.totalorder %s28_s17, %s107_s18  ;;  %p113_p7 = scmp.lt.s32.totalorder %s107_s18, %s107_s18 }
  0x13   :  { %p114_p8 = por %p113_p7, %p112_p6 }
  0x15   :  { %p115_p9 = pnand %p114_p8, %p108_p5 }
  0x17   :  { %118 = shalt.err (!%p115_p9)
}
  0x18   :  { %33 = dma.hbm_to_vmem [thread:$0]  %s175_s1, 256, %s28_s17, [#allocation6], %s146_s12, %s146_s12, %s147_s13  }
  0x19   :  { %139 = dma.done.wait [#allocation3], 256  }
  0x1a   :  { %140 = vsyncadd [#allocation3], 4294967040 }
  0x1b   :  { %141 = dma.done.wait [#allocation6], 256  }
  0x1c   :  { %142 = vsyncadd [#allocation6], 4294967040  ;;  %v45_v0 = vld [vmem:[#allocation2] sm:$0xff]  ;;  %v46_v1 = vld [vmem:[#allocation2 + $0x8] sm:$0xff]  ;;  %s149_s0 = smov [#allocation7]  }
  0x1d   :  { %v47_v2 = vld [vmem:[#allocation5] sm:$0xff]  ;;  %v48_v3 = vld [vmem:[#allocation5 + $0x8] sm:$0xff]  ;;  %s63_s21 = sshll.u32 %s149_s0, 4  ;;  %s64_s21 = int_to_ptr.vmem [resolvable:$true] %s63_s21 }
  0x1e   :  { %v49_v4 = vsub.f32 %v45_v0, %v47_v2  ;;  %v50_v5 = vsub.f32 %v46_v1, %v48_v3  ;;  %s119_s22 = scalar_lea.vmem %s64_s21, 128  ;;  %p124_p11 = scmp.lt.s32.totalorder %s64_s21, %s64_s21 }
  0x1f   :  { %p120_p10 = scmp.ne.s32.totalorder %s64_s21, %s119_s22  ;;  %p125_p12 = scmp.lt.s32.totalorder %s119_s22, %s119_s22 }
  0x20   :  { %v51_v6 = vmul.f32 %v49_v4, %v49_v4  ;;  %v52_v7 = vmul.f32 %v50_v5, %v50_v5 }
  0x21   :  { %p126_p13 = por %p125_p12, %p124_p11 }
  0x22   :  { %v54_v8 = vadd.f32 %v52_v7, %v51_v6 }
  0x23   :  { %p127_p0 = pnand %p126_p13, %p120_p10 }
  0x24   :  { %56 = vst [vmem:[#allocation7] sm:$0xff] %v54_v8 }
  0x25   :  { %130 = shalt.err (!%p127_p0)
}
  0x26   :  { %66 = dma.vmem_to_hbm [thread:$0]  %s64_s21, 128, %s176_s2, [#allocation4]  }
  0x27   :  { %143 = dma.done.wait [#allocation4], 128  }
  0x28   :  { %144 = vsyncadd [#allocation4], 4294967168 }
  0x29   :  { %70 = vsyncpa [#allocation3], 1 }
  0x2a   :  { %71 = vsyncpa [#allocation6], 1 }
  0x2b   :  { %72 = vsyncpa [#allocation4], 1 }

</bundles_post_ra>
